<compile_context>
chip_gen: v7x
topology: tpu7x:2x2x1
jax: 0.10.0
libtpu: 0.0.40
codegen_flags: <defaults>
</compile_context>

<pallas_src>
import numpy as np

import jax
import jax.numpy as jnp
from jax.experimental import pallas as pl
from jax.experimental.pallas import tpu as pltpu


# ----------------------------- parameter setup ------------------------------

def quality_to_factor(quality):
    if quality < 50:
        q = 5000.0 / quality
    else:
        q = 200.0 - quality * 2
    return q / 100.0


def _jpeg_tables():
    # Same construction (including the .T) as the PyTorch reference.
    y = np.array(
        [[16, 11, 10, 16, 24, 40, 51, 61],
         [12, 12, 14, 19, 26, 58, 60, 55],
         [14, 13, 16, 24, 40, 57, 69, 56],
         [14, 17, 22, 29, 51, 87, 80, 62],
         [18, 22, 37, 56, 68, 109, 103, 77],
         [24, 35, 55, 64, 81, 104, 113, 92],
         [49, 64, 78, 87, 103, 121, 120, 101],
         [72, 92, 95, 98, 112, 100, 103, 99]], dtype=np.float64).T
    c = np.full((8, 8), 99.0, dtype=np.float64)
    c[:4, :4] = np.array([[17, 18, 24, 47], [18, 21, 26, 66],
                          [24, 26, 56, 99], [47, 66, 99, 99]],
                         dtype=np.float64).T
    return y, c


def _dct_mat8():
    # D[u, x] = 0.5 * alpha(u) * cos((2x+1) u pi / 16); C = D @ X @ D.T is the
    # reference dct_8x8, X = D.T @ C @ D the reference idct_8x8 (before +128).
    a = np.ones(8, dtype=np.float64)
    a[0] = 1.0 / np.sqrt(2.0)
    d = np.zeros((8, 8), dtype=np.float64)
    for u in range(8):
        for x in range(8):
            d[u, x] = 0.5 * a[u] * np.cos((2 * x + 1) * u * np.pi / 16.0)
    return d


def _pick_tile(dim, quantum, target):
    """Largest multiple of `quantum` dividing `dim` and <= target, else `dim`.

    Falling back to `dim` is always legal for a BlockSpec (block == full axis).
    """
    best = None
    cand = quantum
    limit = min(dim, target)
    while cand <= limit:
        if dim % cand == 0:
            best = cand
        cand += quantum
    return best if best is not None else dim


def _build_constants(s, wc, factor):
    """Block-diagonal DCT/IDCT operands with pooling/upsampling folded in."""
    d = _dct_mat8()

    def bd(m, copies):
        return np.kron(np.eye(copies, dtype=np.float64), m)

    sh, wh = s // 2, wc // 2

    # Luma: plain block-diagonal DCT (left: rows, right: columns) and IDCT.
    dcty_r = bd(d, s // 8)                    # (s, s)
    dcty_c = bd(d.T, wc // 8)                 # (wc, wc)
    idcty_r = dcty_r.T                        # (s, s)
    idcty_c = dcty_c.T                        # (wc, wc)

    # 2x2 average pooling / nearest upsampling operators (linear).
    pr = np.zeros((sh, s), dtype=np.float64)  # rows:  (s/2, s)
    i = np.arange(sh)
    pr[i, 2 * i] = 0.5
    pr[i, 2 * i + 1] = 0.5
    pc = np.zeros((wc, wh), dtype=np.float64)  # cols: (wc, wc/2)
    j = np.arange(wh)
    pc[2 * j, j] = 0.5
    pc[2 * j + 1, j] = 0.5
    ur = 2.0 * pr.T                           # (s, s/2), nearest row upsample
    uc = 2.0 * pc.T                           # (wc/2, wc), nearest col upsample

    dc_r = bd(d, sh // 8)                     # (s/2, s/2)
    dc_c = bd(d.T, wh // 8)                   # (wc/2, wc/2)
    dctc_r = dc_r @ pr                        # (s/2, s):   pool rows + DCT rows
    dctc_c = pc @ dc_c                        # (wc, wc/2): pool cols + DCT cols
    idctc_r = ur @ dc_r.T                     # (s, s/2):   IDCT rows + upsample
    idctc_c = dc_c.T @ uc                     # (wc/2, wc): IDCT cols + upsample

    ytab, ctab = _jpeg_tables()
    qy = np.tile(ytab * factor, (s // 8, wc // 8))      # (s, wc)
    qc = np.tile(ctab * factor, (sh // 8, wh // 8))     # (s/2, wc/2)

    arrs = [dcty_r, dcty_c, idcty_r, idcty_c,
            dctc_r, dctc_c, idctc_r, idctc_c, qy, qc]
    return [jnp.asarray(a.astype(np.float32)) for a in arrs]


# --------------------------------- kernel ------------------------------------

def _diffjpeg_kernel(x_ref,
                     dcty_r_ref, dcty_c_ref, idcty_r_ref, idcty_c_ref,
                     dctc_r_ref, dctc_c_ref, idctc_r_ref, idctc_c_ref,
                     qy_ref, qc_ref, o_ref):
    """Full DiffJPEG round trip on one (S, Wc) tile of one image."""

    def mm(lhs, rhs):
        return jnp.dot(lhs, rhs, preferred_element_type=jnp.float32)

    r = x_ref[0, 0, :, :] * 255.0
    g = x_ref[0, 1, :, :] * 255.0
    b = x_ref[0, 2, :, :] * 255.0

    # RGB -> YCbCr (JPEG).  Chroma kept centred (reference value minus 128).
    y = 0.299 * r + 0.587 * g + 0.114 * b
    cb = -0.168736 * r - 0.331264 * g + 0.5 * b
    cr = 0.5 * r - 0.418688 * g - 0.081312 * b

    # ---- luma: block DCT -> quantise/round/dequantise -> block IDCT.
    q_y = qy_ref[...]
    coef = mm(dcty_r_ref[...], mm(y - 128.0, dcty_c_ref[...]))
    coef = jnp.round(coef / q_y) * q_y
    y_rec = mm(idcty_r_ref[...], mm(coef, idcty_c_ref[...])) + 128.0

    # ---- chroma: (2x2 avg-pool + DCT) and (IDCT + nearest 2x upsample) are
    #      folded into the matrices, so one round trip is just 4 matmuls.
    q_c = qc_ref[...]

    def chroma_roundtrip(c):
        cf = mm(dctc_r_ref[...], mm(c, dctc_c_ref[...]))      # (S/2, Wc/2)
        cf = jnp.round(cf / q_c) * q_c
        return mm(idctc_r_ref[...], mm(cf, idctc_c_ref[...]))  # (S, Wc), centred

    cb_u = chroma_roundtrip(cb)
    cr_u = chroma_roundtrip(cr)

    # ---- YCbCr -> RGB, clamp to [0, 255], rescale to [0, 1].
    rr = y_rec + 1.402 * cr_u
    gg = y_rec - 0.344136 * cb_u - 0.714136 * cr_u
    bb = y_rec + 1.772 * cb_u

    o_ref[0, 0, :, :] = jnp.clip(rr, 0.0, 255.0) / 255.0
    o_ref[0, 1, :, :] = jnp.clip(gg, 0.0, 255.0) / 255.0
    o_ref[0, 2, :, :] = jnp.clip(bb, 0.0, 255.0) / 255.0


# -------------------------------- wrapper -------------------------------------

def diff_jpeg(x, quality=80, *, row_tile=None, col_tile=None):
    """Forward pass of DiffJPEG(height, width, differentiable=False, quality)."""
    n, c, h, w = x.shape
    assert c == 3 and h % 16 == 0 and w % 16 == 0, (
        "DiffJPEG needs NCHW with 3 channels and H, W multiples of 16")
    factor = quality_to_factor(quality)

    s = row_tile if row_tile is not None else _pick_tile(h, 16, 256)
    wc = col_tile if col_tile is not None else _pick_tile(w, 128, 256)
    assert h % s == 0 and s % 16 == 0
    assert w % wc == 0 and wc % 16 == 0 and (wc % 128 == 0 or wc == w)
    # TODO(synk): widths with no multiple-of-128 divisor fall back to a
    # full-width column tile; huge such widths would need a padded two-level
    # column tiling to stay inside VMEM.

    consts = _build_constants(s, wc, factor)
    sh, wh = s // 2, wc // 2

    img_spec = pl.BlockSpec((1, 3, s, wc), lambda a, i, j: (a, 0, i, j))

    def cspec(shape):
        return pl.BlockSpec(shape, lambda a, i, j: (0, 0))

    in_specs = [img_spec,
                cspec((s, s)), cspec((wc, wc)), cspec((s, s)), cspec((wc, wc)),
                cspec((sh, s)), cspec((wc, wh)), cspec((s, sh)), cspec((wh, wc)),
                cspec((s, wc)), cspec((sh, wh))]

    cost = pl.CostEstimate(
        flops=int(7 * (s + wc) * n * h * w),      # ~3.5*(S+Wc) MACs / pixel
        transcendentals=0,
        bytes_accessed=int(8 * 3 * n * h * w))

    return pl.pallas_call(
        _diffjpeg_kernel,
        out_shape=jax.ShapeDtypeStruct((n, 3, h, w), jnp.float32),
        grid=(n, h // s, w // wc),
        in_specs=in_specs,
        out_specs=img_spec,
        compiler_params=pltpu.CompilerParams(
            dimension_semantics=("parallel", "parallel", "parallel"),
            vmem_limit_bytes=32 * 1024 * 1024),
        cost_estimate=cost,
    )(x.astype(jnp.float32), *consts)


# TODO(synk): differentiable=True branch (diff_round soft rounding) not wired
# in; the module's default differentiable=False (torch.round) is implemented.


# ------------------------- numpy reference (for tests) ------------------------

def _reference_numpy(x, quality):
    """Direct blockwise float64 port of compress_jpeg/decompress_jpeg."""
    n, _, h, w = x.shape
    factor = quality_to_factor(quality)
    ytab, ctab = _jpeg_tables()
    qy, qc = ytab * factor, ctab * factor
    d = _dct_mat8()

    img = np.asarray(x, np.float64) * 255.0
    r, g, b = img[:, 0], img[:, 1], img[:, 2]
    y = 0.299 * r + 0.587 * g + 0.114 * b
    cb = -0.168736 * r - 0.331264 * g + 0.5 * b + 128.0
    cr = 0.5 * r - 0.418688 * g - 0.081312 * b + 128.0

    def pool(p):
        return 0.25 * (p[:, 0::2, 0::2] + p[:, 1::2, 0::2] +
                       p[:, 0::2, 1::2] + p[:, 1::2, 1::2])

    def jpeg_plane(p, q):
        hh, ww = p.shape[1:]
        blk = p.reshape(n, hh // 8, 8, ww // 8, 8).transpose(0, 1, 3, 2, 4) - 128.0
        coef = np.einsum('ux,nijxy,vy->nijuv', d, blk, d)
        coef = np.round(coef / q) * q
        rec = np.einsum('ux,nijuv,vy->nijxy', d, coef, d) + 128.0
        return rec.transpose(0, 1, 3, 2, 4).reshape(n, hh, ww)

    y_r = jpeg_plane(y, qy)
    cb_u = jpeg_plane(pool(cb), qc).repeat(2, axis=1).repeat(2, axis=2)
    cr_u = jpeg_plane(pool(cr), qc).repeat(2, axis=1).repeat(2, axis=2)

    rr = y_r + 1.402 * (cr_u - 128.0)
    gg = y_r - 0.344136 * (cb_u - 128.0) - 0.714136 * (cr_u - 128.0)
    bb = y_r + 1.772 * (cb_u - 128.0)
    out = np.stack([rr, gg, bb], axis=1)
    return np.clip(out, 0.0, 255.0) / 255.0


def _check_against_reference(x, quality, **tiles):
    out = jax.block_until_ready(diff_jpeg(x, quality=quality, **tiles))
    ref = _reference_numpy(np.asarray(x), quality)
    err = np.abs(np.asarray(out, np.float64) - ref)
    # Lenient max: a near-tie DCT coefficient that rounds differently from the
    # float64 reference moves a pixel by up to ~q*0.25*1.772/255 ~= 0.07.
    assert err.max() < 0.15 and err.mean() < 0.02, (err.max(), err.mean())
    return out


if __name__ == "__main__":
    key = jax.random.PRNGKey(0)
    k1, k2 = jax.random.split(key)

    # Primary small example (single tile per image).
    x = jax.random.uniform(k1, (2, 3, 16, 16), dtype=jnp.float32)
    out = _check_against_reference(x, quality=80)
    assert out.shape == (2, 3, 16, 16) and out.dtype == jnp.float32
    assert bool(jnp.all(jnp.isfinite(out)))
    assert bool(jnp.all((out >= 0.0) & (out <= 1.0)))

    # Exercise the multi-tile grid path (2x2 tiles of 16x128).
    x2 = jax.random.uniform(k2, (1, 3, 32, 256), dtype=jnp.float32)
    _check_against_reference(x2, quality=80, row_tile=16, col_tile=128)

    print("KERNEL_OK")
</pallas_src>

<mosaic_0001>
module attributes {stable_mosaic.version = 11 : i64} {
  func.func @_diffjpeg_kernel(%arg0: i32, %arg1: i32, %arg2: i32, %arg3: memref<1x3x16x16xf32, #tpu.memory_space<vmem>>, %arg4: memref<16x16xf32, #tpu.memory_space<vmem>>, %arg5: memref<16x16xf32, #tpu.memory_space<vmem>>, %arg6: memref<16x16xf32, #tpu.memory_space<vmem>>, %arg7: memref<16x16xf32, #tpu.memory_space<vmem>>, %arg8: memref<8x16xf32, #tpu.memory_space<vmem>>, %arg9: memref<16x8xf32, #tpu.memory_space<vmem>>, %arg10: memref<16x8xf32, #tpu.memory_space<vmem>>, %arg11: memref<8x16xf32, #tpu.memory_space<vmem>>, %arg12: memref<16x16xf32, #tpu.memory_space<vmem>>, %arg13: memref<8x8xf32, #tpu.memory_space<vmem>>, %arg14: memref<1x3x16x16xf32, #tpu.memory_space<vmem>>) attributes {dimension_semantics = [#tpu.dimension_semantics<parallel>, #tpu.dimension_semantics<parallel>, #tpu.dimension_semantics<parallel>], iteration_bounds = array<i64: 2, 1, 1>, scalar_prefetch = 0 : i64, scratch_operands = 0 : i64, tpu.core_type = #tpu.core_type<tc>, window_params = [{transform_indices = @transform_0, window_bounds = array<i64: 1, 3, 16, 16>}, {pipeline_mode = #tpu.pipeline_mode<synchronous>, transform_indices = @transform_1, window_bounds = array<i64: 16, 16>}, {pipeline_mode = #tpu.pipeline_mode<synchronous>, transform_indices = @transform_2, window_bounds = array<i64: 16, 16>}, {pipeline_mode = #tpu.pipeline_mode<synchronous>, transform_indices = @transform_3, window_bounds = array<i64: 16, 16>}, {pipeline_mode = #tpu.pipeline_mode<synchronous>, transform_indices = @transform_4, window_bounds = array<i64: 16, 16>}, {pipeline_mode = #tpu.pipeline_mode<synchronous>, transform_indices = @transform_5, window_bounds = array<i64: 8, 16>}, {pipeline_mode = #tpu.pipeline_mode<synchronous>, transform_indices = @transform_6, window_bounds = array<i64: 16, 8>}, {pipeline_mode = #tpu.pipeline_mode<synchronous>, transform_indices = @transform_7, window_bounds = array<i64: 16, 8>}, {pipeline_mode = #tpu.pipeline_mode<synchronous>, transform_indices = @transform_8, window_bounds = array<i64: 8, 16>}, {pipeline_mode = #tpu.pipeline_mode<synchronous>, transform_indices = @transform_9, window_bounds = array<i64: 16, 16>}, {pipeline_mode = #tpu.pipeline_mode<synchronous>, transform_indices = @transform_10, window_bounds = array<i64: 8, 8>}, {transform_indices = @transform_11, window_bounds = array<i64: 1, 3, 16, 16>}]} {
    %c0 = arith.constant 0 : index
    %c0_0 = arith.constant 0 : index
    %c0_1 = arith.constant 0 : index
    %c0_2 = arith.constant 0 : index
    %0 = vector.load %arg3[%c0, %c0_0, %c0_1, %c0_2] : memref<1x3x16x16xf32, #tpu.memory_space<vmem>>, vector<1x1x16x16xf32>
    %1 = vector.shape_cast %0 : vector<1x1x16x16xf32> to vector<16x16xf32>
    %cst = arith.constant 2.550000e+02 : f32
    %2 = vector.broadcast %cst : f32 to vector<16x16xf32>
    %3 = arith.mulf %1, %2 : vector<16x16xf32>
    %c0_3 = arith.constant 0 : index
    %c1 = arith.constant 1 : index
    %c0_4 = arith.constant 0 : index
    %c0_5 = arith.constant 0 : index
    %4 = vector.load %arg3[%c0_3, %c1, %c0_4, %c0_5] : memref<1x3x16x16xf32, #tpu.memory_space<vmem>>, vector<1x1x16x16xf32>
    %5 = vector.shape_cast %4 : vector<1x1x16x16xf32> to vector<16x16xf32>
    %cst_6 = arith.constant 2.550000e+02 : f32
    %6 = vector.broadcast %cst_6 : f32 to vector<16x16xf32>
    %7 = arith.mulf %5, %6 : vector<16x16xf32>
    %c0_7 = arith.constant 0 : index
    %c2 = arith.constant 2 : index
    %c0_8 = arith.constant 0 : index
    %c0_9 = arith.constant 0 : index
    %8 = vector.load %arg3[%c0_7, %c2, %c0_8, %c0_9] : memref<1x3x16x16xf32, #tpu.memory_space<vmem>>, vector<1x1x16x16xf32>
    %9 = vector.shape_cast %8 : vector<1x1x16x16xf32> to vector<16x16xf32>
    %cst_10 = arith.constant 2.550000e+02 : f32
    %10 = vector.broadcast %cst_10 : f32 to vector<16x16xf32>
    %11 = arith.mulf %9, %10 : vector<16x16xf32>
    %cst_11 = arith.constant 2.990000e-01 : f32
    %12 = vector.broadcast %cst_11 : f32 to vector<16x16xf32>
    %13 = arith.mulf %12, %3 : vector<16x16xf32>
    %cst_12 = arith.constant 5.870000e-01 : f32
    %14 = vector.broadcast %cst_12 : f32 to vector<16x16xf32>
    %15 = arith.mulf %14, %7 : vector<16x16xf32>
    %16 = arith.addf %13, %15 : vector<16x16xf32>
    %cst_13 = arith.constant 1.140000e-01 : f32
    %17 = vector.broadcast %cst_13 : f32 to vector<16x16xf32>
    %18 = arith.mulf %17, %11 : vector<16x16xf32>
    %19 = arith.addf %16, %18 : vector<16x16xf32>
    %cst_14 = arith.constant -1.687360e-01 : f32
    %20 = vector.broadcast %cst_14 : f32 to vector<16x16xf32>
    %21 = arith.mulf %20, %3 : vector<16x16xf32>
    %cst_15 = arith.constant 3.312640e-01 : f32
    %22 = vector.broadcast %cst_15 : f32 to vector<16x16xf32>
    %23 = arith.mulf %22, %7 : vector<16x16xf32>
    %24 = arith.subf %21, %23 : vector<16x16xf32>
    %cst_16 = arith.constant 5.000000e-01 : f32
    %25 = vector.broadcast %cst_16 : f32 to vector<16x16xf32>
    %26 = arith.mulf %25, %11 : vector<16x16xf32>
    %27 = arith.addf %24, %26 : vector<16x16xf32>
    %cst_17 = arith.constant 5.000000e-01 : f32
    %28 = vector.broadcast %cst_17 : f32 to vector<16x16xf32>
    %29 = arith.mulf %28, %3 : vector<16x16xf32>
    %cst_18 = arith.constant 4.186880e-01 : f32
    %30 = vector.broadcast %cst_18 : f32 to vector<16x16xf32>
    %31 = arith.mulf %30, %7 : vector<16x16xf32>
    %32 = arith.subf %29, %31 : vector<16x16xf32>
    %cst_19 = arith.constant 8.131200e-02 : f32
    %33 = vector.broadcast %cst_19 : f32 to vector<16x16xf32>
    %34 = arith.mulf %33, %11 : vector<16x16xf32>
    %35 = arith.subf %32, %34 : vector<16x16xf32>
    %c0_20 = arith.constant 0 : index
    %c0_21 = arith.constant 0 : index
    %36 = vector.load %arg12[%c0_20, %c0_21] : memref<16x16xf32, #tpu.memory_space<vmem>>, vector<16x16xf32>
    %c0_22 = arith.constant 0 : index
    %c0_23 = arith.constant 0 : index
    %37 = vector.load %arg4[%c0_22, %c0_23] : memref<16x16xf32, #tpu.memory_space<vmem>>, vector<16x16xf32>
    %cst_24 = arith.constant 1.280000e+02 : f32
    %38 = vector.broadcast %cst_24 : f32 to vector<16x16xf32>
    %39 = arith.subf %19, %38 : vector<16x16xf32>
    %c0_25 = arith.constant 0 : index
    %c0_26 = arith.constant 0 : index
    %40 = vector.load %arg5[%c0_25, %c0_26] : memref<16x16xf32, #tpu.memory_space<vmem>>, vector<16x16xf32>
    %cst_27 = arith.constant dense<0.000000e+00> : vector<16x16xf32>
    %41 = tpu.matmul %39, %40, %cst_27 {dimension_numbers = #tpu.dot_dimension_numbers<[1], [0], [0], [1], [0, 0, 1, 1], [], []>} : vector<16x16xf32>, vector<16x16xf32>, vector<16x16xf32> -> vector<16x16xf32>
    %cst_28 = arith.constant dense<0.000000e+00> : vector<16x16xf32>
    %42 = tpu.matmul %37, %41, %cst_28 {dimension_numbers = #tpu.dot_dimension_numbers<[1], [0], [0], [1], [0, 0, 1, 1], [], []>} : vector<16x16xf32>, vector<16x16xf32>, vector<16x16xf32> -> vector<16x16xf32>
    %43 = arith.divf %42, %36 : vector<16x16xf32>
    %44 = math.roundeven %43 : vector<16x16xf32>
    %45 = arith.mulf %44, %36 : vector<16x16xf32>
    %c0_29 = arith.constant 0 : index
    %c0_30 = arith.constant 0 : index
    %46 = vector.load %arg6[%c0_29, %c0_30] : memref<16x16xf32, #tpu.memory_space<vmem>>, vector<16x16xf32>
    %c0_31 = arith.constant 0 : index
    %c0_32 = arith.constant 0 : index
    %47 = vector.load %arg7[%c0_31, %c0_32] : memref<16x16xf32, #tpu.memory_space<vmem>>, vector<16x16xf32>
    %cst_33 = arith.constant dense<0.000000e+00> : vector<16x16xf32>
    %48 = tpu.matmul %45, %47, %cst_33 {dimension_numbers = #tpu.dot_dimension_numbers<[1], [0], [0], [1], [0, 0, 1, 1], [], []>} : vector<16x16xf32>, vector<16x16xf32>, vector<16x16xf32> -> vector<16x16xf32>
    %cst_34 = arith.constant dense<0.000000e+00> : vector<16x16xf32>
    %49 = tpu.matmul %46, %48, %cst_34 {dimension_numbers = #tpu.dot_dimension_numbers<[1], [0], [0], [1], [0, 0, 1, 1], [], []>} : vector<16x16xf32>, vector<16x16xf32>, vector<16x16xf32> -> vector<16x16xf32>
    %cst_35 = arith.constant 1.280000e+02 : f32
    %50 = vector.broadcast %cst_35 : f32 to vector<16x16xf32>
    %51 = arith.addf %49, %50 : vector<16x16xf32>
    %c0_36 = arith.constant 0 : index
    %c0_37 = arith.constant 0 : index
    %52 = vector.load %arg13[%c0_36, %c0_37] : memref<8x8xf32, #tpu.memory_space<vmem>>, vector<8x8xf32>
    %c0_38 = arith.constant 0 : index
    %c0_39 = arith.constant 0 : index
    %53 = vector.load %arg8[%c0_38, %c0_39] : memref<8x16xf32, #tpu.memory_space<vmem>>, vector<8x16xf32>
    %c0_40 = arith.constant 0 : index
    %c0_41 = arith.constant 0 : index
    %54 = vector.load %arg9[%c0_40, %c0_41] : memref<16x8xf32, #tpu.memory_space<vmem>>, vector<16x8xf32>
    %cst_42 = arith.constant dense<0.000000e+00> : vector<16x8xf32>
    %55 = tpu.matmul %27, %54, %cst_42 {dimension_numbers = #tpu.dot_dimension_numbers<[1], [0], [0], [1], [0, 0, 1, 1], [], []>} : vector<16x16xf32>, vector<16x8xf32>, vector<16x8xf32> -> vector<16x8xf32>
    %cst_43 = arith.constant dense<0.000000e+00> : vector<8x8xf32>
    %56 = tpu.matmul %53, %55, %cst_43 {dimension_numbers = #tpu.dot_dimension_numbers<[1], [0], [0], [1], [0, 0, 1, 1], [], []>} : vector<8x16xf32>, vector<16x8xf32>, vector<8x8xf32> -> vector<8x8xf32>
    %57 = arith.divf %56, %52 : vector<8x8xf32>
    %58 = math.roundeven %57 : vector<8x8xf32>
    %59 = arith.mulf %58, %52 : vector<8x8xf32>
    %c0_44 = arith.constant 0 : index
    %c0_45 = arith.constant 0 : index
    %60 = vector.load %arg10[%c0_44, %c0_45] : memref<16x8xf32, #tpu.memory_space<vmem>>, vector<16x8xf32>
    %c0_46 = arith.constant 0 : index
    %c0_47 = arith.constant 0 : index
    %61 = vector.load %arg11[%c0_46, %c0_47] : memref<8x16xf32, #tpu.memory_space<vmem>>, vector<8x16xf32>
    %cst_48 = arith.constant dense<0.000000e+00> : vector<8x16xf32>
    %62 = tpu.matmul %59, %61, %cst_48 {dimension_numbers = #tpu.dot_dimension_numbers<[1], [0], [0], [1], [0, 0, 1, 1], [], []>} : vector<8x8xf32>, vector<8x16xf32>, vector<8x16xf32> -> vector<8x16xf32>
    %cst_49 = arith.constant dense<0.000000e+00> : vector<16x16xf32>
    %63 = tpu.matmul %60, %62, %cst_49 {dimension_numbers = #tpu.dot_dimension_numbers<[1], [0], [0], [1], [0, 0, 1, 1], [], []>} : vector<16x8xf32>, vector<8x16xf32>, vector<16x16xf32> -> vector<16x16xf32>
    %c0_50 = arith.constant 0 : index
    %c0_51 = arith.constant 0 : index
    %64 = vector.load %arg8[%c0_50, %c0_51] : memref<8x16xf32, #tpu.memory_space<vmem>>, vector<8x16xf32>
    %c0_52 = arith.constant 0 : index
    %c0_53 = arith.constant 0 : index
    %65 = vector.load %arg9[%c0_52, %c0_53] : memref<16x8xf32, #tpu.memory_space<vmem>>, vector<16x8xf32>
    %cst_54 = arith.constant dense<0.000000e+00> : vector<16x8xf32>
    %66 = tpu.matmul %35, %65, %cst_54 {dimension_numbers = #tpu.dot_dimension_numbers<[1], [0], [0], [1], [0, 0, 1, 1], [], []>} : vector<16x16xf32>, vector<16x8xf32>, vector<16x8xf32> -> vector<16x8xf32>
    %cst_55 = arith.constant dense<0.000000e+00> : vector<8x8xf32>
    %67 = tpu.matmul %64, %66, %cst_55 {dimension_numbers = #tpu.dot_dimension_numbers<[1], [0], [0], [1], [0, 0, 1, 1], [], []>} : vector<8x16xf32>, vector<16x8xf32>, vector<8x8xf32> -> vector<8x8xf32>
    %68 = arith.divf %67, %52 : vector<8x8xf32>
    %69 = math.roundeven %68 : vector<8x8xf32>
    %70 = arith.mulf %69, %52 : vector<8x8xf32>
    %c0_56 = arith.constant 0 : index
    %c0_57 = arith.constant 0 : index
    %71 = vector.load %arg10[%c0_56, %c0_57] : memref<16x8xf32, #tpu.memory_space<vmem>>, vector<16x8xf32>
    %c0_58 = arith.constant 0 : index
    %c0_59 = arith.constant 0 : index
    %72 = vector.load %arg11[%c0_58, %c0_59] : memref<8x16xf32, #tpu.memory_space<vmem>>, vector<8x16xf32>
    %cst_60 = arith.constant dense<0.000000e+00> : vector<8x16xf32>
    %73 = tpu.matmul %70, %72, %cst_60 {dimension_numbers = #tpu.dot_dimension_numbers<[1], [0], [0], [1], [0, 0, 1, 1], [], []>} : vector<8x8xf32>, vector<8x16xf32>, vector<8x16xf32> -> vector<8x16xf32>
    %cst_61 = arith.constant dense<0.000000e+00> : vector<16x16xf32>
    %74 = tpu.matmul %71, %73, %cst_61 {dimension_numbers = #tpu.dot_dimension_numbers<[1], [0], [0], [1], [0, 0, 1, 1], [], []>} : vector<16x8xf32>, vector<8x16xf32>, vector<16x16xf32> -> vector<16x16xf32>
    %cst_62 = arith.constant 1.402000e+00 : f32
    %75 = vector.broadcast %cst_62 : f32 to vector<16x16xf32>
    %76 = arith.mulf %75, %74 : vector<16x16xf32>
    %77 = arith.addf %51, %76 : vector<16x16xf32>
    %cst_63 = arith.constant 3.441360e-01 : f32
    %78 = vector.broadcast %cst_63 : f32 to vector<16x16xf32>
    %79 = arith.mulf %78, %63 : vector<16x16xf32>
    %80 = arith.subf %51, %79 : vector<16x16xf32>
    %cst_64 = arith.constant 7.141360e-01 : f32
    %81 = vector.broadcast %cst_64 : f32 to vector<16x16xf32>
    %82 = arith.mulf %81, %74 : vector<16x16xf32>
    %83 = arith.subf %80, %82 : vector<16x16xf32>
    %cst_65 = arith.constant 1.772000e+00 : f32
    %84 = vector.broadcast %cst_65 : f32 to vector<16x16xf32>
    %85 = arith.mulf %84, %63 : vector<16x16xf32>
    %86 = arith.addf %51, %85 : vector<16x16xf32>
    %cst_66 = arith.constant 0.000000e+00 : f32
    %cst_67 = arith.constant 2.550000e+02 : f32
    %87 = vector.broadcast %cst_66 : f32 to vector<16x16xf32>
    %88 = arith.maximumf %87, %77 : vector<16x16xf32>
    %89 = vector.broadcast %cst_67 : f32 to vector<16x16xf32>
    %90 = arith.minimumf %89, %88 : vector<16x16xf32>
    %cst_68 = arith.constant 2.550000e+02 : f32
    %91 = vector.broadcast %cst_68 : f32 to vector<16x16xf32>
    %92 = arith.divf %90, %91 : vector<16x16xf32>
    %c0_69 = arith.constant 0 : index
    %c0_70 = arith.constant 0 : index
    %c0_71 = arith.constant 0 : index
    %c0_72 = arith.constant 0 : index
    %93 = vector.load %arg14[%c0_69, %c0_70, %c0_71, %c0_72] : memref<1x3x16x16xf32, #tpu.memory_space<vmem>>, vector<1x1x16x16xf32>
    %94 = vector.shape_cast %93 : vector<1x1x16x16xf32> to vector<16x16xf32>
    %95 = vector.shape_cast %92 : vector<16x16xf32> to vector<1x1x16x16xf32>
    tpu.vector_store %arg14[%c0_69, %c0_70, %c0_71, %c0_72], %95 {strides = array<i32>} : memref<1x3x16x16xf32, #tpu.memory_space<vmem>>, vector<1x1x16x16xf32>,
    %cst_73 = arith.constant 0.000000e+00 : f32
    %cst_74 = arith.constant 2.550000e+02 : f32
    %96 = vector.broadcast %cst_73 : f32 to vector<16x16xf32>
    %97 = arith.maximumf %96, %83 : vector<16x16xf32>
    %98 = vector.broadcast %cst_74 : f32 to vector<16x16xf32>
    %99 = arith.minimumf %98, %97 : vector<16x16xf32>
    %cst_75 = arith.constant 2.550000e+02 : f32
    %100 = vector.broadcast %cst_75 : f32 to vector<16x16xf32>
    %101 = arith.divf %99, %100 : vector<16x16xf32>
    %c0_76 = arith.constant 0 : index
    %c1_77 = arith.constant 1 : index
    %c0_78 = arith.constant 0 : index
    %c0_79 = arith.constant 0 : index
    %102 = vector.load %arg14[%c0_76, %c1_77, %c0_78, %c0_79] : memref<1x3x16x16xf32, #tpu.memory_space<vmem>>, vector<1x1x16x16xf32>
    %103 = vector.shape_cast %102 : vector<1x1x16x16xf32> to vector<16x16xf32>
    %104 = vector.shape_cast %101 : vector<16x16xf32> to vector<1x1x16x16xf32>
    tpu.vector_store %arg14[%c0_76, %c1_77, %c0_78, %c0_79], %104 {strides = array<i32>} : memref<1x3x16x16xf32, #tpu.memory_space<vmem>>, vector<1x1x16x16xf32>,
    %cst_80 = arith.constant 0.000000e+00 : f32
    %cst_81 = arith.constant 2.550000e+02 : f32
    %105 = vector.broadcast %cst_80 : f32 to vector<16x16xf32>
    %106 = arith.maximumf %105, %86 : vector<16x16xf32>
    %107 = vector.broadcast %cst_81 : f32 to vector<16x16xf32>
    %108 = arith.minimumf %107, %106 : vector<16x16xf32>
    %cst_82 = arith.constant 2.550000e+02 : f32
    %109 = vector.broadcast %cst_82 : f32 to vector<16x16xf32>
    %110 = arith.divf %108, %109 : vector<16x16xf32>
    %c0_83 = arith.constant 0 : index
    %c2_84 = arith.constant 2 : index
    %c0_85 = arith.constant 0 : index
    %c0_86 = arith.constant 0 : index
    %111 = vector.load %arg14[%c0_83, %c2_84, %c0_85, %c0_86] : memref<1x3x16x16xf32, #tpu.memory_space<vmem>>, vector<1x1x16x16xf32>
    %112 = vector.shape_cast %111 : vector<1x1x16x16xf32> to vector<16x16xf32>
    %113 = vector.shape_cast %110 : vector<16x16xf32> to vector<1x1x16x16xf32>
    tpu.vector_store %arg14[%c0_83, %c2_84, %c0_85, %c0_86], %113 {strides = array<i32>} : memref<1x3x16x16xf32, #tpu.memory_space<vmem>>, vector<1x1x16x16xf32>,
    return
  }
  func.func @transform_0(%arg0: i32, %arg1: i32, %arg2: i32) -> (i32, i32, i32, i32) {
    %c0_i32 = arith.constant 0 : i32
    %c0_i32_0 = arith.constant 0 : i32
    return %arg0, %c0_i32, %arg1, %arg2 : i32, i32, i32, i32
  }
  func.func @transform_1(%arg0: i32, %arg1: i32, %arg2: i32) -> (i32, i32) {
    %c0_i32 = arith.constant 0 : i32
    %c0_i32_0 = arith.constant 0 : i32
    %c0_i32_1 = arith.constant 0 : i32
    return %c0_i32, %c0_i32_0 : i32, i32
  }
  func.func @transform_2(%arg0: i32, %arg1: i32, %arg2: i32) -> (i32, i32) {
    %c0_i32 = arith.constant 0 : i32
    %c0_i32_0 = arith.constant 0 : i32
    %c0_i32_1 = arith.constant 0 : i32
    return %c0_i32, %c0_i32_0 : i32, i32
  }
  func.func @transform_3(%arg0: i32, %arg1: i32, %arg2: i32) -> (i32, i32) {
    %c0_i32 = arith.constant 0 : i32
    %c0_i32_0 = arith.constant 0 : i32
    %c0_i32_1 = arith.constant 0 : i32
    return %c0_i32, %c0_i32_0 : i32, i32
  }
  func.func @transform_4(%arg0: i32, %arg1: i32, %arg2: i32) -> (i32, i32) {
    %c0_i32 = arith.constant 0 : i32
    %c0_i32_0 = arith.constant 0 : i32
    %c0_i32_1 = arith.constant 0 : i32
    return %c0_i32, %c0_i32_0 : i32, i32
  }
  func.func @transform_5(%arg0: i32, %arg1: i32, %arg2: i32) -> (i32, i32) {
    %c0_i32 = arith.constant 0 : i32
    %c0_i32_0 = arith.constant 0 : i32
    %c0_i32_1 = arith.constant 0 : i32
    return %c0_i32, %c0_i32_0 : i32, i32
  }
  func.func @transform_6(%arg0: i32, %arg1: i32, %arg2: i32) -> (i32, i32) {
    %c0_i32 = arith.constant 0 : i32
    %c0_i32_0 = arith.constant 0 : i32
    %c0_i32_1 = arith.constant 0 : i32
    return %c0_i32, %c0_i32_0 : i32, i32
  }
  func.func @transform_7(%arg0: i32, %arg1: i32, %arg2: i32) -> (i32, i32) {
    %c0_i32 = arith.constant 0 : i32
    %c0_i32_0 = arith.constant 0 : i32
    %c0_i32_1 = arith.constant 0 : i32
    return %c0_i32, %c0_i32_0 : i32, i32
  }
  func.func @transform_8(%arg0: i32, %arg1: i32, %arg2: i32) -> (i32, i32) {
    %c0_i32 = arith.constant 0 : i32
    %c0_i32_0 = arith.constant 0 : i32
    %c0_i32_1 = arith.constant 0 : i32
    return %c0_i32, %c0_i32_0 : i32, i32
  }
  func.func @transform_9(%arg0: i32, %arg1: i32, %arg2: i32) -> (i32, i32) {
    %c0_i32 = arith.constant 0 : i32
    %c0_i32_0 = arith.constant 0 : i32
    %c0_i32_1 = arith.constant 0 : i32
    return %c0_i32, %c0_i32_0 : i32, i32
  }
  func.func @transform_10(%arg0: i32, %arg1: i32, %arg2: i32) -> (i32, i32) {
    %c0_i32 = arith.constant 0 : i32
    %c0_i32_0 = arith.constant 0 : i32
    %c0_i32_1 = arith.constant 0 : i32
    return %c0_i32, %c0_i32_0 : i32, i32
  }
  func.func @transform_11(%arg0: i32, %arg1: i32, %arg2: i32) -> (i32, i32, i32, i32) {
    %c0_i32 = arith.constant 0 : i32
    %c0_i32_0 = arith.constant 0 : i32
    return %arg0, %c0_i32, %arg1, %arg2 : i32, i32, i32, i32
  }
}

</mosaic_0001>

<bundles_post_ra>
// kernel: tpu_custom_call.1
= control target key start
LH: loop header
LB: loop body
LE: loop exit
PB: predicated region body
PF: predicated region fallthrough
CT: control target
= control target key end

     0   :  { %s2659_s0 = inlined_call_operand.hbm [shape: f32[2,3,16,16], index: 0, kind: input, shape index: {}]   ;;  %s2660_s1 = inlined_call_operand.vmem [shape: f32[16,16], index: 1, kind: input, shape index: {}]   ;;  %s2661_s2 = inlined_call_operand.vmem [shape: f32[16,16], index: 2, kind: input, shape index: {}]   ;;  %s2662_s3 = inlined_call_operand.vmem [shape: f32[16,16], index: 3, kind: input, shape index: {}]   ;;  %s2663_s4 = inlined_call_operand.hbm [shape: f32[16,16], index: 4, kind: input, shape index: {}]   ;;  %s2664_s5 = inlined_call_operand.hbm [shape: f32[8,16], index: 5, kind: input, shape index: {}]   ;;  %s2665_s6 = inlined_call_operand.vmem [shape: f32[16,8], index: 6, kind: input, shape index: {}]   ;;  %s2666_s7 = inlined_call_operand.vmem [shape: f32[16,8], index: 7, kind: input, shape index: {}]   ;;  %s2667_s8 = inlined_call_operand.hbm [shape: f32[8,16], index: 8, kind: input, shape index: {}]   ;;  %s2668_s9 = inlined_call_operand.vmem [shape: f32[16,16], index: 9, kind: input, shape index: {}]   ;;  %s2669_s10 = inlined_call_operand.vmem [shape: f32[8,8], index: 10, kind: input, shape index: {}]   ;;  %s2670_s11 = inlined_call_operand.hbm [shape: f32[2,3,16,16], index: 11, kind: output, shape index: {}]  }
   0x1   :  { %2682 = sst [smem:[#allocation18_spill]] %s2662_s3 }
   0x2   :  { %2683 = sst [smem:[#allocation19_spill]] %s2666_s7 }
   0x3   :  { %2684 = sst [smem:[#allocation20_spill]] %s2668_s9 }
   0x4   :  { %2685 = sst [smem:[#allocation21_spill]] %s2669_s10 }
   0x5   :  { %2686 = sst [smem:[#allocation22_spill]] %s2670_s11 }
   0x6   :  { %16 = vsyncpa [#allocation3], 0 }
   0x7   :  { %18 = vsyncpa [#allocation3 + $0x1], 0 }
   0x8   :  { %19 = vsyncpa [#allocation6], 0 }
   0x9   :  { %20 = vsyncpa [#allocation9], 0 }
   0xa   :  { %21 = vsyncpa [#allocation4], 0 }
   0xb   :  { %23 = vsyncpa [#allocation4 + $0x1], 0  ;;  %s2252_s17 = smov 0   ;;  %s2254_s18 = smov 0  }
   0xc   :  { %s2256_s19 = smov 0   ;;  %s2258_s20 = smov 0  }
   0xd   :  { %s2260_s21 = smov 0   ;;  %s2262_s22 = smov 0  }
   0xe LB: > { %2687 = sst [smem:[#allocation15_spill]] %s2158_s17  ;;  %s1669_s23 = sadd.s32 4294967295, %s2178_s22   ;;  %s2178_s22 = sphi %s2262_s22, %s29_s22   ;;  %s2174_s21 = sphi %s2260_s21, %s2718_s21   ;;  %s2170_s20 = sphi %s2258_s20, %s2717_s20   ;;  %s2166_s19 = sphi %s2256_s19, %s2716_s19   ;;  %s2162_s18 = sphi %s2254_s18, %s2715_s18   ;;  %s2158_s17 = sphi %s2252_s17, %s2714_s17  }
   0xf   : > { %2688 = sst [smem:[#allocation16_spill]] %s2170_s20  ;;  %s1670_s24 = sadd.s32 4294967294, %s2178_s22  }
  0x10   : > { %p72_p0 = scmp.ne.s32.totalorder %s2162_s18, %s2158_s17  ;;  %p2286_p1 = scmp.eq.s32.totalorder %s1669_s23, 0 }
  0x11   : > { %p2290_p2 = scmp.eq.s32.totalorder %s1669_s23, 1  ;;  %p316_p3 = scmp.eq.s32.totalorder %s1670_s24, 1 }
  0x12   : > { %s2689_s25 = scalar_select %p2286_p1, 1, 0 }
  0x13   : > { %s2690_s26 = scalar_select %p2290_p2, 1, 0 }
  0x14   : > { %p2296_p4 = por %p2286_p1, %p72_p0  ;;  %p1671_p5 = scmp.ge.s32.totalorder %s2178_s22, 1 }
  0x15   : > { %p2301_p6 = por %p316_p3, %p72_p0  ;;  %p323_p7 = scmp.lt.s32.totalorder %s2178_s22, 3 }
  0x16   : > { %s2691_s27 = scalar_select %p2296_p4, 1, 0 }
  0x17   : > { %s2692_s28 = scalar_select %p2301_p6, 1, 0 }
  0x18   : > { %p2306_p8 = pnand %p1671_p5, %p323_p7  ;;  %s2180_s30 = smov [#allocation5]  }
  0x19   : > { %2693 = sst [smem:[#allocation17_spill]] %s2692_s28  ;;  %s344_s12 = sshll.u32 %s2180_s30, 4  ;;  %s2310_s12 = int_to_ptr.vmem [resolvable:$true] %s344_s12 }
  0x1a   : > { %s2694_s29 = scalar_select %p2306_p8, 1, 0 }
  0x1b   : > { %p1884_p9 = pneg %p2306_p8  ;;  %s2181_s14 = smov [#allocation7]  }
  0x1c   : > { %s358_s15 = sshll.u32 %s2181_s14, 4  ;;  %s2182_s16 = smov [#allocation8]   ;;  %s2321_s15 = int_to_ptr.vmem [resolvable:$true] %s358_s15 }
  0x1d   : > { %p2317_p11 = pnand %p1884_p9, %p2286_p1  ;;  %s2323_s23 = sshll.u32 %s2182_s16, 4  ;;  %s376_s23 = int_to_ptr.vmem [resolvable:$true] %s2323_s23 }
  0x1e   : > { %s1974_s28 = scalar_lea.hbm %s2663_s4, 256 }
  0x1f   : > { %p1975_p12 = scmp.ne.s32.totalorder %s2663_s4, %s1974_s28  ;;  %p2333_p13 = pneg %p2317_p11 }
  0x20   : > { %p1981_p5 = scmp.lt.u32.totalorder %s1974_s28, %s2663_s4 }
  0x21   : > { %p1977_p0 = pnand %p2333_p13, %p1975_p12 }
  0x23   : > { %p1978_p3 = pneg %p1977_p0 }
  0x25   : > { %p1983_p7 = pnand %p1981_p5, %p1978_p3 }
  0x27   : > { %1986 = shalt.err (!%p1983_p7)
}
  0x28   : > { %s1987_s11 = scalar_lea.vmem %s2310_s12, 256  ;;  %p1995_p1 = scmp.lt.s32.totalorder %s2310_s12, %s2310_s12 }
  0x29   : > { %p1988_p9 = scmp.ne.s32.totalorder %s2310_s12, %s1987_s11  ;;  %p1996_p4 = scmp.lt.s32.totalorder %s1987_s11, %s1987_s11 }
  0x2b   : > { %p1990_p10 = pnand %p1988_p9, %p2333_p13  ;;  %p1997_p12 = por %p1996_p4, %p1995_p1 }
  0x2d   : > { %p1991_p6 = pneg %p1990_p10 }
  0x2f   : > { %p1998_p0 = pnand %p1997_p12, %p1991_p6 }
  0x31   : > { %2001 = shalt.err (!%p1998_p0)
}
  0x32   : > { %s2681_s17 = smov 128   ;;  %s2184_s28 = smov 8  }
  0x33   : > { %1887 = dma.hbm_to_vmem [thread:$0]  (!%p2317_p11), %s2663_s4, 256, %s2310_s12, [#allocation6], %s2681_s17, %s2681_s17, %s2184_s28  }
  0x34   : > { %s2002_s11 = scalar_lea.hbm %s2664_s5, 128 }
  0x35   : > { %p2003_p1 = scmp.ne.s32.totalorder %s2664_s5, %s2002_s11  ;;  %p2009_p10 = scmp.lt.u32.totalorder %s2002_s11, %s2664_s5 }
  0x37   : > { %p2005_p4 = pnand %p2003_p1, %p2333_p13 }
  0x39   : > { %p2006_p6 = pneg %p2005_p4 }
  0x3b   : > { %p2011_p3 = pnand %p2009_p10, %p2006_p6 }
  0x3d   : > { %2014 = shalt.err (!%p2011_p3)
}
  0x3e   : > { %s2015_s12 = scalar_lea.vmem %s2321_s15, 128  ;;  %p2023_p12 = scmp.lt.s32.totalorder %s2321_s15, %s2321_s15 }
  0x3f   : > { %p2016_p5 = scmp.ne.s32.totalorder %s2321_s15, %s2015_s12  ;;  %p2024_p0 = scmp.lt.s32.totalorder %s2015_s12, %s2015_s12 }
  0x41   : > { %p2018_p7 = pnand %p2016_p5, %p2333_p13  ;;  %p2025_p1 = por %p2024_p0, %p2023_p12 }
  0x43   : > { %p2019_p9 = pneg %p2018_p7 }
  0x45   : > { %p2026_p4 = pnand %p2025_p1, %p2019_p9 }
  0x47   : > { %2029 = shalt.err (!%p2026_p4)
}
  0x48   : > { %1890 = dma.hbm_to_vmem [thread:$0]  (!%p2317_p11), %s2664_s5, 128, %s2321_s15, [#allocation6]  }
  0x49   : > { %s2030_s24 = scalar_lea.hbm %s2667_s8, 128 }
  0x4a   : > { %p2031_p6 = scmp.ne.s32.totalorder %s2667_s8, %s2030_s24  ;;  %p2037_p5 = scmp.lt.u32.totalorder %s2030_s24, %s2667_s8 }
  0x4c   : > { %p2033_p10 = pnand %p2031_p6, %p2333_p13 }
  0x4e   : > { %p2034_p3 = pneg %p2033_p10 }
  0x50   : > { %p2039_p7 = pnand %p2037_p5, %p2034_p3 }
  0x52   : > { %2042 = shalt.err (!%p2039_p7)
}
  0x53   : > { %s2043_s12 = scalar_lea.vmem %s376_s23, 128  ;;  %p2051_p1 = scmp.lt.s32.totalorder %s376_s23, %s376_s23 }
  0x54   : > { %p2044_p9 = scmp.ne.s32.totalorder %s376_s23, %s2043_s12  ;;  %p2052_p4 = scmp.lt.s32.totalorder %s2043_s12, %s2043_s12 }
  0x56   : > { %p2046_p12 = pnand %p2044_p9, %p2333_p13  ;;  %p2053_p8 = por %p2052_p4, %p2051_p1 }
  0x58   : > { %p2047_p0 = pneg %p2046_p12 }
  0x5a   : > { %p2054_p2 = pnand %p2053_p8, %p2047_p0 }
  0x5c   : > { %2057 = shalt.err (!%p2054_p2)
}
  0x5d   : > { %1893 = dma.hbm_to_vmem [thread:$0]  (!%p2317_p11), %s2667_s8, 128, %s376_s23, [#allocation9]  }
  0x5e   : > { %s59_s20 = sadd.s32 1, %s2166_s19  ;;  %s48_s7 = sadd.s32 1, %s2174_s21 }
  0x5f   : > { %p66_p2 = scmp.ne.s32.totalorder %s2166_s19, %s2162_s18  ;;  %p50_p8 = scmp.ge.s32.totalorder %s48_s7, 2 }
  0x60   : > { %p67_p13 = scmp.eq.s32.totalorder %s2178_s22, 0  ;;  %p2697_p6 = scmp.ne.s32.totalorder %s2690_s26, 0 }
  0x61   : > { %p1905_p3 = scmp.lt.s32.totalorder %s2178_s22, 2  ;;  %s2720_s7 = smov (%p50_p8, %s48_s7), 0 }
  0x62   : > { %p2406_p10 = por %p2697_p6, %p66_p2  ;;  %p68_p5 = por %p67_p13, %p66_p2 }
  0x63   : > { %s392_s9 = sand.u32 1, %s2166_s19   ;;  %s52_s10 = ssub.s32 %s2174_s21, %s2720_s7 }
  0x64   : > { %p57_p7 = scmp.eq.s32.totalorder %s52_s10, 0  ;;  %s1860_s23 = smul.u32 48, %s392_s9 }
  0x65   : > { %s1861_s24 = smul.u32 768, %s2174_s21  ;;  %p2417_p11 = pnand %p1905_p3, %p68_p5 }
  0x66   : > { %s2422_s26 = scalar_select %p57_p7, %s2166_s19, %s59_s20  }
  0x67   : > { %s2427_s11 = scalar_lea.hbm %s2659_s0, %s1861_s24  ;;  %s396_s12 = scalar_lea.vmem [#allocation2], %s1860_s23 }
  0x68   : > { %s406_s15 = sshll.u32 %s396_s12, 4  ;;  %s2431_s3 = scalar_lea.sflag [#allocation3], %s392_s9  ;;  %s2429_s15 = int_to_ptr.vmem [resolvable:$true] %s406_s15 }
  0x69   : > { %s2058_s10 = scalar_lea.hbm %s2427_s11, 768  ;;  %p2060_p12 = pneg %p2417_p11 }
  0x6a   : > { %p2059_p9 = scmp.ne.s32.totalorder %s2427_s11, %s2058_s10  ;;  %s2063_s14 = scalar_lea.hbm %s2659_s0, 1536 }
  0x6b   : > { %p2064_p4 = scmp.lt.u32.totalorder %s2427_s11, %s2659_s0  ;;  %p2065_p2 = scmp.lt.u32.totalorder %s2063_s14, %s2058_s10 }
  0x6c   : > { %p2061_p0 = pnand %p2060_p12, %p2059_p9  ;;  %p2067_p13 = scmp.lt.u32.totalorder %s2058_s10, %s2427_s11 }
  0x6d   : > { %p2066_p8 = por %p2065_p2, %p2064_p4 }
  0x6e   : > { %p2062_p1 = pneg %p2061_p0 }
  0x6f   : > { %p2068_p6 = por %p2067_p13, %p2066_p8 }
  0x71   : > { %p2069_p3 = pnand %p2068_p6, %p2062_p1 }
  0x73   : > { %2072 = shalt.err (!%p2069_p3)
}
  0x74   : > { %s2073_s9 = scalar_lea.vmem %s2429_s15, 768  ;;  %s2185_s23 = smov [#allocation2]  }
  0x75   : > { %p2074_p5 = scmp.ne.s32.totalorder %s2429_s15, %s2073_s9  ;;  %s2078_s12 = sshll.u32 %s2185_s23, 4  ;;  %s2079_s12 = int_to_ptr.vmem [resolvable:$false] %s2078_s12 }
  0x76   : > { %s2080_s17 = scalar_lea.vmem %s2079_s12, 1536  ;;  %p2081_p0 = scmp.lt.s32.totalorder %s2429_s15, %s2079_s12 }
  0x77   : > { %p2076_p7 = pnand %p2074_p5, %p2060_p12  ;;  %p2082_p4 = scmp.lt.s32.totalorder %s2080_s17, %s2073_s9 }
  0x79   : > { %p2077_p9 = pneg %p2076_p7  ;;  %p2083_p2 = por %p2082_p4, %p2081_p0 }
  0x7b   : > { %p2084_p8 = pnand %p2083_p2, %p2077_p9 }
  0x7d   : > { %2087 = shalt.err (!%p2084_p8)
}
  0x7e   : > { %s2700_s10 = smov 128   ;;  %p2701_p12 = scmp.ne.s32.totalorder %s2694_s29, 0 }
  0x7f   : > { %1897 = dma.hbm_to_vmem [thread:$0]  (!%p2417_p11), %s2427_s11, 768, %s2429_s15, %s2431_s3, %s2700_s10, %s2700_s10, %s2184_s28  }
  0x80   : > { %418 = sbr.rel (%p2701_p12) target bundleno = 1926 (0x786), region = 64  ;;  %s2465_s20 = sand.u32 (!%p2701_p12), 1, %s2162_s18  }
  0x81   : > { %s1862_s24 = smul.u32 (!%p2701_p12), 48, %s2465_s20  ;;  %s421_s14 = scalar_lea.sflag (!%p2701_p12), [#allocation3], %s2465_s20 }
  0x82   : > { %p2702_p1 = scmp.ne.s32.totalorder (!%p2701_p12), %s2691_s27, 0 }
  0x83   : > { %s424_s30 = scalar_lea.vmem (!%p2701_p12), [#allocation2], %s1862_s24 }
  0x87   : > { %2141 = dma.done.wait (%p2702_p1), %s421_s14, 768  }
  0x88   : > { %2143 = vsyncadd (%p2702_p1), %s421_s14, 4294966528  ;;  %p2703_p11 = scmp.ne.s32.totalorder %s2689_s25, 0 }
  0x8a   : > { %2145 = dma.done.wait (%p2703_p11), [#allocation6], 384  }
  0x8b   : > { %2147 = vsyncadd (%p2703_p11), [#allocation6], 4294966912 }
  0x8c   : > { %2149 = dma.done.wait (%p2703_p11), [#allocation9], 128  }
  0x8d   : > { %2151 = vsyncadd (%p2703_p11), [#allocation9], 4294967168  ;;  %v527_v0 = vld [vmem:[%s2661_s2] sm:$0xff]  ;;  %v528_v1 = vld [vmem:[%s2661_s2 + $0x8] sm:$0xff]  ;;  %vm529_vm0 = vcmask 130048   ;;  %s2705_s25 = sld [smem:[#allocation18_spill]] }
  0x8e   : > { %v477_v2 = vld [vmem:[%s424_s30] sm:$0xff]  ;;  %v1830_v3 = vpack.c.bf16 %v528_v1, %v527_v0  ;;  %v1681_v5 = vld [vmem:[%s424_s30 + $0x10] sm:$0xff]  ;;  %v478_v7 = vld [vmem:[%s424_s30 + $0x8] sm:$0xff]  ;;  %v2186_v61 = vmov 0.0   ;;  %vm2187_vm1 = vmmov 0   ;;  %s2706_s23 = sld [smem:[#allocation21_spill]] }
  0x8f   : > { %v2489_v4 = vmul.f32 255.0, %v477_v2  ;;  %v1683_v6 = vld [vmem:[%s424_s30 + $0x20] sm:$0xff]  ;;  %v2491_v8 = vmul.f32 255.0, %v1681_v5  ;;  %v2495_v10 = vmul.f32 255.0, %v478_v7  ;;  %v1682_v11 = vld [vmem:[%s424_s30 + $0x18] sm:$0xff]  ;;  %v1684_v12 = vld [vmem:[%s424_s30 + $0x28] sm:$0xff] }
  0x90   : > { %v2493_v9 = vmul.f32 255.0, %v1683_v6  ;;  %1831 = vmatprep.subr.bf16.mxu0 %v1830_v3  ;;  %v2498_v14 = vmul.f32 255.0, %v1682_v11  ;;  %v2500_v15 = vmul.f32 255.0, %v1684_v12  ;;  %v523_v27 = vld [vmem:[%s2660_s1] sm:$0xff]  ;;  %v524_v31 = vld [vmem:[%s2660_s1 + $0x8] sm:$0xff]  ;;  %s2704_s30 = sld [smem:[#allocation20_spill]] }
  0x91   : > { %v491_v13 = vmul.f32 0.299, %v2489_v4  ;;  %1833 = vmatpush3.bf16.msra.mxu0 %v1830_v3  ;;  %v493_v16 = vmul.f32 0.587, %v2491_v8  ;;  %v492_v18 = vmul.f32 0.299, %v2495_v10  ;;  %1765 = vmatprep.mubr.msk.f32.mxu1 %vm529_vm0, %v523_v27 }
  0x92   : > { %v497_v17 = vmul.f32 0.114, %v2493_v9  ;;  %v494_v19 = vmul.f32 0.587, %v2498_v14  ;;  %v498_v20 = vmul.f32 0.114, %v2500_v15 }
  0x93   : > { %v495_v21 = vadd.f32 %v493_v16, %v491_v13  ;;  %v702_v32 = vld [vmem:[#allocation5] sm:$0xff]  ;;  %v703_v33 = vld [vmem:[#allocation5 + $0x8] sm:$0xff]  ;;  %v501_v41 = vmul.f32 -0.168736, %v2489_v4  ;;  %v503_v42 = vmul.f32 0.331264, %v2491_v8 }
  0x94   : > { %v496_v22 = vadd.f32 %v494_v19, %v492_v18  ;;  %v1838_v34 = vpack.c.bf16 %v703_v33, %v702_v32  ;;  %v868_v35 = vld [vmem:[%s2665_s6] sm:$0xff]  ;;  %v869_v36 = vld [vmem:[%s2665_s6 + $0x8] sm:$0xff]  ;;  %v502_v47 = vmul.f32 -0.168736, %v2495_v10  ;;  %v504_v48 = vmul.f32 0.331264, %v2498_v14 }
  0x95   : > { %v499_v23 = vadd.f32 %v497_v17, %v495_v21  ;;  %v2523_v37 = vpack.c.bf16 %v869_v36, %v868_v35  ;;  %v505_v50 = vsub.f32 %v501_v41, %v503_v42  ;;  %v507_v51 = vmul.f32 0.5, %v2493_v9  ;;  %v700_v60 = vld [vmem:[%s2705_s25] sm:$0xff]  ;;  %v701_v3 = vld [vmem:[%s2705_s25 + $0x8] sm:$0xff]  ;;  %v867_v7 = vld [vmem:[#allocation7] sm:$0xff]  ;;  %s2707_s10 = sld [smem:[#allocation19_spill]]  ;;  %s2586_s28 = scalar_lea.vmem [#allocation10], %s1862_s24 }
  0x96   : > { %v500_v24 = vadd.f32 %v498_v20, %v496_v22  ;;  %1839 = vmatprep.subr.bf16.mxu0 %v1838_v34  ;;  %v522_v38 = vld [vmem:[%s2704_s30 + $0x8] sm:$0xff]  ;;  %v521_v39 = vld [vmem:[%s2704_s30] sm:$0xff]  ;;  %v506_v54 = vsub.f32 %v502_v47, %v504_v48  ;;  %v508_v55 = vmul.f32 0.5, %v2500_v15  ;;  %v2188_v6 = vmov 0.0|0.0   ;;  %v1030_v11 = vld [vmem:[#allocation8] sm:$0xff]  ;;  %s2708_s24 = sld [smem:[#allocation16_spill]] }
  0x97   : > { %v1685_v25 = vadd.f32 -128.0, %v499_v23  ;;  %1968 = vrcp.f32 %v522_v38  ;;  %v509_v57 = vadd.f32 %v507_v51, %v505_v50  ;;  %v2558_v12 = vld [vmem:[%s2706_s23] sm:$0xff]  ;;  %v511_v16 = vmul.f32 0.5, %v2489_v4  ;;  %s1548_s15 = sshll.u32 %s2586_s28, 4  ;;  %s2709_s16 = sld [smem:[#allocation22_spill]]  ;;  %s2602_s15 = int_to_ptr.vmem [resolvable:$true] %s1548_s15 }
  0x98   : > { %v1686_v26 = vadd.f32 -128.0, %v500_v24  ;;  %1970 = vrcp.f32 %v521_v39  ;;  %v510_v59 = vadd.f32 %v508_v55, %v506_v54  ;;  %v513_v17 = vmul.f32 0.418688, %v2491_v8  ;;  %s1532_s23 = scalar_lea.sflag [#allocation4], %s2465_s20  ;;  %s2088_s12 = scalar_lea.vmem %s2602_s15, 768 }
  0x99   : > { %1758 = vmatprep.mubr.msk.f32.mxu0 %vm529_vm0, %v1685_v25  ;;  %1972 = vrcp.f32 %v2558_v12  ;;  %v512_v20 = vmul.f32 0.5, %v2495_v10  ;;  %v514_v21 = vmul.f32 0.418688, %v2498_v14  ;;  %v517_v24 = vmul.f32 0.081312, %v2493_v9  ;;  %p2089_p13 = scmp.ne.s32.totalorder %s2602_s15, %s2088_s12  ;;  %s2189_s17 = smov [#allocation10]  }
  0x9a   : > { %1759 = vmatmul.mubr.msk.f32.vlgmr.msra.gmra.mrb[0].mxu0 %vm529_vm0, %v1686_v26  ;;  %v515_v23 = vsub.f32 %v511_v16, %v513_v17  ;;  %vm1031_vm2 = vcmask 64512   ;;  %s2092_s14 = sshll.u32 %s2189_s17, 4  ;;  %s2093_s14 = int_to_ptr.vmem [resolvable:$false] %s2092_s14 }
  0x9b   : > { %1841 = vmatpush3.bf16.msra.mxu0 %v1838_v34  ;;  %v1028_v9 = vld [vmem:[%s2707_s10] sm:$0xff]  ;;  %v1029_v14 = vld [vmem:[%s2707_s10 + $0x8] sm:$0xff]  ;;  %p2090_p6 = pnand %p2089_p13, %p2406_p10  ;;  %s2094_s29 = scalar_lea.vmem %s2093_s14, 1536 }
  0x9c   : > { %1847 = vmatprep.subr.bf16.mxu0 %v2523_v37  ;;  %v519_v4 = vsub.f32 %v515_v23, %v517_v24  ;;  %s1867_s11 = smul.u32 768, %s2708_s24  ;;  %p2095_p5 = scmp.lt.s32.totalorder %s2602_s15, %s2093_s14 }
  0x9d   : > { %p2091_p3 = pneg %p2090_p6  ;;  %p2096_p7 = scmp.lt.s32.totalorder %s2094_s29, %s2088_s12 }
  0x9e   : > { %s2600_s9 = scalar_lea.hbm %s2709_s16, %s1867_s11 }
  0x9f   : > { %p2097_p9 = por %p2096_p7, %p2095_p5 }
  0xa1   : > { %v1969_v40 = vpop.eup %1968  ;;  %p2098_p0 = pnand %p2097_p9, %p2091_p3 }
  0xa2   : > { %v1971_v43 = vpop.eup %1970 }
  0xa3   : > { %v1973_v19 = vpop.eup %1972 }
 0x16d   : > { %v1760_v28 = vpop.f32.mrb[0].mxu0 }
 0x16e   : > { %v602_v29 = vpop.f32.mrb[1].mxu0 }
 0x16f   : > { %v1834_v30 = vpack.c.bf16 %v1760_v28, %v602_v29  ;;  %v516_v28 = vsub.f32 %v512_v20, %v514_v21  ;;  %v518_v29 = vmul.f32 0.081312, %v2500_v15 }
 0x171   : > { %1835 = vmatprep.subr.bf16.mxu1 %v1834_v30 }
 0x172   : > { %1837 = vmatpush3.bf16.msra.mxu1 %v1834_v30  ;;  %v520_v30 = vsub.f32 %v516_v28, %v518_v29 }
 0x175   : > { %1766 = vmatmul.mubr.msk.f32.vlgmr.msra.gmra.mrb[0].mxu1 %vm529_vm0, %v524_v31 }
 0x176   : > { %1779 = vmatprep.mubr.msk.f32.mxu1 %vm529_vm0, %v700_v60 }
 0x248   : > { %v1767_v44 = vpop.f32.mrb[0].mxu1 }
 0x249   : > { %v695_v45 = vmul.f32 %v1969_v40, %v1767_v44  ;;  %v683_v46 = vpop.f32.mrb[1].mxu1 }
 0x24a   : > { %v693_v49 = vmul.f32 %v1971_v43, %v683_v46 }
 0x24b   : > { %v1864_v52 = vround.rtne.f32 %v695_v45 }
 0x24c   : > { %v1863_v53 = vround.rtne.f32 %v693_v49 }
 0x24d   : > { %v699_v58 = vmul.f32 %v1864_v52, %v522_v38 }
 0x24e   : > { %v698_v56 = vmul.f32 %v1863_v53, %v521_v39 }
 0x250   : > { %1772 = vmatprep.mubr.msk.f32.mxu0 %vm529_vm0, %v698_v56 }
 0x251   : > { %1773 = vmatmul.mubr.msk.f32.vlgmr.msra.gmra.mrb[2].mxu0 %vm529_vm0, %v699_v58 }
 0x252   : > { %1849 = vmatpush3.bf16.msra.mxu0 %v2523_v37  ;;  %1786 = vmatprep.mubr.msk.f32.mxu0 %vm529_vm0, %v509_v57 }
 0x253   : > { %1796 = vmatprep.subr.mxu0 %v2186_v61 }
 0x255   : > { %1787 = vmatmul.mubr.msk.f32.vlgmr.msra.gmra.mrb[4].mxu0 %vm529_vm0, %v510_v59 }
 0x256   : > { %1798 = vmatprep.mubr.msk.f32.mxu0 %vm2187_vm1, %v2186_v61  ;;  %1797 = vmatpush3.msra.mxu0 %v1030_v11 }
 0x257   : > { %1854 = vmatprep.subr.bf16.mxu0 %v2523_v37 }
 0x324   : > { %v1774_v62 = vpop.f32.mrb[2].mxu0 }
 0x325   : > { %v776_v63 = vpop.f32.mrb[3].mxu0 }
 0x326   : > { %v1842_v0 = vpack.c.bf16 %v1774_v62, %v776_v63 }
 0x328   : > { %1843 = vmatprep.subr.bf16.mxu1 %v1842_v0  ;;  %v1788_v1 = vpop.f32.mrb[4].mxu0 }
 0x329   : > { %1845 = vmatpush3.bf16.msra.mxu1 %v1842_v0  ;;  %v942_v2 = vpop.f32.mrb[5].mxu0 }
 0x32a   : > { %v1851_v5 = vpack.c.bf16 %v1788_v1, %v942_v2  ;;  %1850 = vmatprep.subr.bf16.mxu1 %v2188_v6 }
 0x32c   : > { %1780 = vmatmul.mubr.msk.f32.vlgmr.msra.gmra.mrb[2].mxu1 %vm529_vm0, %v701_v3 }
 0x32d   : > { %1852 = vmatpush3.bf16.msra.mxu1 %v1851_v5  ;;  %1793 = vmatprep.mubr.msk.f32.mxu1 %vm2187_vm1, %v2186_v61 }
 0x330   : > { %1794 = vmatmul.mubr.msk.f32.vlgmr.msra.gmra.mrb[4].mxu1 %vm529_vm0, %v867_v7 }
 0x331   : > { %1803 = vmatprep.mubr.msk.f32.mxu1 %vm1031_vm2, %v1028_v9 }
 0x3ff   : > { %v1781_v13 = vpop.f32.mrb[2].mxu1 }
 0x400   : > { %v857_v18 = vpop.f32.mrb[3].mxu1  ;;  %v863_v35 = vadd.f32 128.0, %v1781_v13 }
 0x401   : > { %v858_v38 = vadd.f32 128.0, %v857_v18 }
 0x403   : > { %v1020_v22 = vpop.f32.mrb[4].mxu1 }
 0x404   : > { %v1025_v25 = vmul.f32 %v1973_v19, %v1020_v22  ;;  %v1795_v26 = vpop.f32.mrb[5].mxu1 }
 0x406   : > { %v1865_v27 = vround.rtne.f32 %v1025_v25 }
 0x408   : > { %v1027_v8 = vmul.f32 %v1865_v27, %v2558_v12 }
 0x40a   : > { %1799 = vmatmul.mubr.msk.f32.vlgmr.msra.gmra.mrb[6].mxu0 %vm1031_vm2, %v1027_v8 }
 0x40b   : > { %1856 = vmatpush3.bf16.msra.mxu0 %v2523_v37  ;;  %1810 = vmatprep.mubr.msk.f32.mxu0 %vm529_vm0, %v519_v4 }
 0x40c   : > { %1820 = vmatprep.subr.mxu0 %v2186_v61 }
 0x40e   : > { %1811 = vmatmul.mubr.msk.f32.vlgmr.msra.gmra.mrb[8].mxu0 %vm529_vm0, %v520_v30 }
 0x40f   : > { %1821 = vmatpush3.msra.mxu0 %v1030_v11  ;;  %1822 = vmatprep.mubr.msk.f32.mxu0 %vm2187_vm1, %v2186_v61 }
 0x4dd   : > { %v1101_v10 = vpop.f32.mrb[6].mxu0 }
 0x4de   : > { %v1800_v15 = vpop.f32.mrb[7].mxu0  ;;  %1801 = vmatprep.subr.mxu1 %v1101_v10 }
 0x4df   : > { %1802 = vmatpush3.msra.mxu1 %v1101_v10 }
 0x4e0   : > { %1804 = vmatmul.mubr.msk.f32.vlgmr.msra.gmra.mrb[6].mxu1 %vm1031_vm2, %v1029_v14  ;;  %1857 = vmatprep.subr.bf16.mxu1 %v2188_v6 }
 0x4e1   : > { %v1812_v31 = vpop.f32.mrb[8].mxu0  ;;  %1817 = vmatprep.mubr.msk.f32.mxu1 %vm2187_vm1, %v2186_v61 }
 0x4e2   : > { %v1258_v32 = vpop.f32.mrb[9].mxu0 }
 0x4e3   : > { %v1858_v33 = vpack.c.bf16 %v1812_v31, %v1258_v32 }
 0x4e5   : > { %1859 = vmatpush3.bf16.msra.mxu1 %v1858_v33 }
 0x4e8   : > { %1818 = vmatmul.mubr.msk.f32.vlgmr.msra.gmra.mrb[8].mxu1 %vm529_vm0, %v867_v7 }
 0x4e9   : > { %1827 = vmatprep.mubr.msk.f32.mxu1 %vm1031_vm2, %v1028_v9 }
 0x5b3   : > { %v1805_v34 = vpop.f32.mrb[6].mxu1 }
 0x5b4   : > { %v1501_v36 = vmul.f32 1.772, %v1805_v34  ;;  %v1177_v37 = vpop.f32.mrb[7].mxu1  ;;  %v1493_v55 = vmul.f32 0.344136, %v1805_v34 }
 0x5b5   : > { %v1500_v39 = vmul.f32 1.772, %v1177_v37  ;;  %v1492_v56 = vmul.f32 0.344136, %v1177_v37 }
 0x5b6   : > { %v1503_v40 = vadd.f32 %v1501_v36, %v863_v35  ;;  %v1495_v58 = vsub.f32 %v863_v35, %v1493_v55 }
 0x5b7   : > { %v1502_v41 = vadd.f32 %v1500_v39, %v858_v38  ;;  %v1494_v62 = vsub.f32 %v858_v38, %v1492_v56 }
 0x5b8   : > { %v1523_v42 = vmax.f32 %v1503_v40, 0.0 }
 0x5b9   : > { %v1522_v43 = vmax.f32 %v1502_v41, 0.0 }
 0x5ba   : > { %v1525_v44 = vmin.f32 %v1523_v42, 255.0 }
 0x5bb   : > { %v1524_v45 = vmin.f32 %v1522_v43, 255.0  ;;  %v1333_v46 = vpop.f32.mrb[8].mxu1 }
 0x5bc   : > { %v1527_v47 = vmul.f32 0.003921569, %v1525_v44  ;;  %v1337_v48 = vmul.f32 %v1973_v19, %v1333_v46  ;;  %v1819_v49 = vpop.f32.mrb[9].mxu1 }
 0x5bd   : > { %v1526_v50 = vmul.f32 0.003921569, %v1524_v45 }
 0x5be   : > { %1710 = vst.msk [vmem:[%s2586_s28 + $0x28] sm:$0xff] %vm529_vm0, %v1527_v47  ;;  %v1866_v51 = vround.rtne.f32 %v1337_v48 }
 0x5bf   : > { %1709 = vst.msk [vmem:[%s2586_s28 + $0x20] sm:$0xff] %vm529_vm0, %v1526_v50 }
 0x5c0   : > { %v1339_v52 = vmul.f32 %v1866_v51, %v2558_v12 }
 0x5c2   : > { %1823 = vmatmul.mubr.msk.f32.vlgmr.msra.gmra.mrb[10].mxu0 %vm1031_vm2, %v1339_v52 }
 0x695   : > { %v1409_v53 = vpop.f32.mrb[10].mxu0 }
 0x696   : > { %v1824_v54 = vpop.f32.mrb[11].mxu0  ;;  %1825 = vmatprep.subr.mxu1 %v1409_v53 }
 0x697   : > { %1826 = vmatpush3.msra.mxu1 %v1409_v53 }
 0x698   : > { %1828 = vmatmul.mubr.msk.f32.vlgmr.msra.gmra.mrb[10].mxu1 %vm1031_vm2, %v1029_v14 }
 0x76b   : > { %v1829_v57 = vpop.f32.mrb[10].mxu1 }
 0x76c   : > { %v1489_v59 = vmul.f32 1.402, %v1829_v57  ;;  %v1497_v60 = vmul.f32 0.714136, %v1829_v57  ;;  %v1479_v61 = vpop.f32.mrb[11].mxu1 }
 0x76d   : > { %v1488_v63 = vmul.f32 1.402, %v1479_v61  ;;  %v1496_v0 = vmul.f32 0.714136, %v1479_v61 }
 0x76e   : > { %v1491_v1 = vadd.f32 %v1489_v59, %v863_v35  ;;  %v1499_v2 = vsub.f32 %v1495_v58, %v1497_v60 }
 0x76f   : > { %v1490_v3 = vadd.f32 %v1488_v63, %v858_v38  ;;  %v1498_v5 = vsub.f32 %v1494_v62, %v1496_v0 }
 0x770   : > { %v1505_v6 = vmax.f32 %v1491_v1, 0.0  ;;  %v1514_v7 = vmax.f32 %v1499_v2, 0.0 }
 0x771   : > { %v1504_v11 = vmax.f32 %v1490_v3, 0.0  ;;  %v1513_v12 = vmax.f32 %v1498_v5, 0.0 }
 0x772   : > { %v1507_v13 = vmin.f32 %v1505_v6, 255.0  ;;  %v1516_v16 = vmin.f32 %v1514_v7, 255.0 }
 0x773   : > { %v1506_v17 = vmin.f32 %v1504_v11, 255.0  ;;  %v1515_v18 = vmin.f32 %v1513_v12, 255.0 }
 0x774   : > { %v1510_v19 = vmul.f32 0.003921569, %v1507_v13  ;;  %v1518_v20 = vmul.f32 0.003921569, %v1516_v16 }
 0x775   : > { %v1509_v21 = vmul.f32 0.003921569, %v1506_v17  ;;  %v1517_v22 = vmul.f32 0.003921569, %v1515_v18 }
 0x776   : > { %1512 = vst.msk [vmem:[%s2586_s28 + $0x8] sm:$0xff] %vm529_vm0, %v1510_v19  ;;  %1708 = vst.msk [vmem:[%s2586_s28 + $0x18] sm:$0xff] %vm529_vm0, %v1518_v20 }
 0x777   : > { %1511 = vst.msk [vmem:[%s2586_s28] sm:$0xff] %vm529_vm0, %v1509_v21  ;;  %1707 = vst.msk [vmem:[%s2586_s28 + $0x10] sm:$0xff] %vm529_vm0, %v1517_v22 }
 0x778   : > { %2101 = shalt.err (!%p2098_p0)
}
 0x779   : > { %s2102_s28 = scalar_lea.hbm %s2600_s9, 768  ;;  %s2106_s27 = scalar_lea.hbm %s2709_s16, 1536 }
 0x77a   : > { %p2103_p4 = scmp.ne.s32.totalorder %s2600_s9, %s2102_s28  ;;  %p2107_p12 = scmp.lt.u32.totalorder %s2600_s9, %s2709_s16 }
 0x77b   : > { %p2108_p1 = scmp.lt.u32.totalorder %s2106_s27, %s2102_s28  ;;  %p2110_p13 = scmp.lt.u32.totalorder %s2102_s28, %s2600_s9 }
 0x77c   : > { %p2104_p2 = pnand %p2103_p4, %p2406_p10 }
 0x77d   : > { %p2109_p11 = por %p2108_p1, %p2107_p12 }
 0x77e   : > { %p2105_p8 = pneg %p2104_p2 }
 0x77f   : > { %p2111_p6 = por %p2110_p13, %p2109_p11 }
 0x781   : > { %p2112_p3 = pnand %p2111_p6, %p2105_p8 }
 0x783   : > { %2115 = shalt.err (!%p2112_p3)
}
 0x784   : > { %s2190_s12 = smov 128   ;;  %s2191_s14 = smov 8  }
 0x785   : > { %1882 = dma.vmem_to_hbm [thread:$0]  (%p2406_p10), %s2602_s15, 768, %s2600_s9, %s1532_s23, %s2190_s12, %s2190_s12, %s2191_s14  }
 0x786 PF: > { %s2710_s29 = sld [smem:[#allocation15_spill]]  ;;  %s2711_s24 = sld [smem:[#allocation17_spill]] }
 0x787   : > { %p2713_p7 = scmp.ge.s32.totalorder %s2178_s22, 2 }
 0x78c   : > { %s1563_s11 = sand.u32 1, %s2710_s29   ;;  %p2712_p5 = scmp.ne.s32.totalorder %s2711_s24, 0 }
 0x78d   : > { %s1564_s28 = scalar_lea.sflag [#allocation4], %s1563_s11 }
 0x78e   : > { %p1899_p9 = pnand %p2713_p7, %p2712_p5 }
 0x790   : > { %2153 = dma.done.wait (!%p1899_p9), %s1564_s28, 768  }
 0x791   : > { %2155 = vsyncadd (!%p1899_p9), %s1564_s28, 4294966528  ;;  %s29_s22 = sadd.s32 1, %s2178_s22   ;;  %s2714_s17 = smov %s2162_s18 }
 0x792   : > { %p26_p0 = scmp.ge.s32.totalorder %s29_s22, 4   ;;  %s2715_s18 = smov %s2166_s19 }
 0x793   : > { %s2716_s19 = smov %s2422_s26  ;;  %s2717_s20 = smov %s2174_s21 }
 0x794   : > { %s2718_s21 = smov %s2720_s7  ;;  %28 = sbr.rel (!%p26_p0) target bundleno = 14 (0xe), region = 125 }
 0x79b   :  { %1569 = vsyncpa [#allocation3], 1 }
 0x79c   :  { %1571 = vsyncpa [#allocation3 + $0x1], 1 }
 0x79d   :  { %1572 = vsyncpa [#allocation6], 1 }
 0x79e   :  { %1573 = vsyncpa [#allocation9], 1 }
 0x79f   :  { %1574 = vsyncpa [#allocation4], 1 }
 0x7a0   :  { %1576 = vsyncpa [#allocation4 + $0x1], 1 }

</bundles_post_ra>
